<compile_context>
chip_gen: v6e
topology: v6e:2x2x1
jax: 0.10.0
libtpu: 0.0.40
codegen_flags: <defaults>
</compile_context>

<pallas_src>
import jax
import jax.numpy as jnp
from jax.experimental import pallas as pl
from jax.experimental.pallas import tpu as pltpu


def mlp_kernel(x_ref, w1_ref, b1_ref, w2_ref, b2_ref, w3_ref, b3_ref, ot_ref):
    """Fused Linear->ReLU->Linear->ReLU->Linear on one batch tile.

    x_ref : [tile, n_in]   batch tile, straight HBM layout
    W refs: PyTorch layout [out, in];  b refs: [out, 1]
    ot_ref: [n_out, tile]  batch on the 128-lane axis (lane-dense stores)
    """
    # Put batch on the lane axis in-kernel (XLU transpose, idle slot).
    xt = x_ref[...].T                                           # [n_in, tile]

    # h1^T = relu(W1 @ x^T + b1)                                -> [n_h1, tile]
    h1 = jnp.dot(w1_ref[...], xt.astype(w1_ref.dtype),
                 preferred_element_type=jnp.float32) + b1_ref[...]
    h1 = jnp.maximum(h1, 0.0)
    # Dropout(0.4) -> identity at inference.

    # h2^T = relu(W2 @ h1^T + b2)                               -> [n_h2, tile]
    h2 = jnp.dot(w2_ref[...], h1.astype(w2_ref.dtype),
                 preferred_element_type=jnp.float32) + b2_ref[...]
    h2 = jnp.maximum(h2, 0.0)
    # Dropout(0.4) -> identity at inference.

    # out^T = W3 @ h2^T + b3                                    -> [n_out, tile]
    out = jnp.dot(w3_ref[...], h2.astype(w3_ref.dtype),
                  preferred_element_type=jnp.float32) + b3_ref[...]
    ot_ref[...] = out.astype(ot_ref.dtype)


def _round_up(x, m):
    return ((x + m - 1) // m) * m


def _choose_tile(batch, batch_tile):
    """Batch-tile selection (tile = lane extent of the output block).

    * batch <= 256: one block covering the whole batch (block dims equal the
      full array dims -> always a legal BlockSpec), so no padding and no
      ragged block at all.
    * larger batch: big tiles (fewer ~0.35us grid steps), but capped so the
      grid has >= 2 steps and the "parallel" axis can shard across the two
      v7x TensorCores.  The last block may be ragged; Pallas DMAs only the
      valid window, so no HBM traffic is spent on padding.
    VMEM stays KB-to-low-MB scale at these shapes on every generation
    (including v7x's 64 MiB), so no vmem_limit override is needed.
    """
    if batch <= 256:
        return batch
    cap = _round_up(batch_tile, 128)
    return min(cap, _round_up(pl.cdiv(batch, 2), 128))


def mlp_forward(x, params, *, batch_tile=2048, compute_dtype=None):
    """x: [B, n_in].  params: dict (w1,b1,w2,b2,w3,b3), W: [out, in], b: [out, 1].

    compute_dtype: optional MXU-operand dtype (e.g. jnp.bfloat16).  Only the
    few-KB weights are cast here; pass x already in that dtype from upstream
    if you want the dominant HBM read halved (casting x in this wrapper would
    cost an extra read+write of x and is deliberately not done).
    """
    w1, b1, w2, b2, w3, b3 = (params[k] for k in ("w1", "b1", "w2", "b2", "w3", "b3"))
    B, n_in = x.shape
    n_h1 = w1.shape[0]
    n_h2 = w2.shape[0]
    n_out = w3.shape[0]

    if compute_dtype is not None:
        w1, w2, w3 = (w.astype(compute_dtype) for w in (w1, w2, w3))

    tile = _choose_tile(B, batch_tile)
    grid = (pl.cdiv(B, tile),)

    in_specs = [
        pl.BlockSpec((tile, n_in), lambda i: (i, 0)),    # x, tiled over batch rows
        pl.BlockSpec((n_h1, n_in), lambda i: (0, 0)),    # W1 (VMEM-resident)
        pl.BlockSpec((n_h1, 1), lambda i: (0, 0)),       # b1
        pl.BlockSpec((n_h2, n_h1), lambda i: (0, 0)),    # W2
        pl.BlockSpec((n_h2, 1), lambda i: (0, 0)),       # b2
        pl.BlockSpec((n_out, n_h2), lambda i: (0, 0)),   # W3
        pl.BlockSpec((n_out, 1), lambda i: (0, 0)),      # b3
    ]
    # Lane-dense output: [n_out, B], batch on the 128-lane axis.
    out_specs = pl.BlockSpec((n_out, tile), lambda i: (0, i))

    out_t = pl.pallas_call(
        mlp_kernel,
        out_shape=jax.ShapeDtypeStruct((n_out, B), jnp.float32),
        grid_spec=pl.GridSpec(
            grid=grid,
            in_specs=in_specs,
            out_specs=out_specs,
        ),
        compiler_params=pltpu.CompilerParams(
            dimension_semantics=("parallel",),
        ),
    )(x, w1, b1, w2, b2, w3, b3)

    # Only remaining wrapper op: a [n_out, B] -> [B, n_out] transpose
    # (n_out * B * 4 bytes -- negligible next to the x read).
    return out_t.T


def init_params(key, n_in, n_out, n_hidden1=32, n_hidden2=32):
    """Deterministic init mimicking nn.Linear's uniform(-1/sqrt(fan_in), +).

    Weights stored PyTorch-style [out, in]; biases as [out, 1].
    """
    ks = jax.random.split(key, 6)

    def linear(kw, kb, fan_in, fan_out):
        bound = 1.0 / jnp.sqrt(fan_in)
        w = jax.random.uniform(kw, (fan_out, fan_in), jnp.float32, -bound, bound)
        b = jax.random.uniform(kb, (fan_out, 1), jnp.float32, -bound, bound)
        return w, b

    w1, b1 = linear(ks[0], ks[1], n_in, n_hidden1)
    w2, b2 = linear(ks[2], ks[3], n_hidden1, n_hidden2)
    w3, b3 = linear(ks[4], ks[5], n_hidden2, n_out)
    return {"w1": w1, "b1": b1, "w2": w2, "b2": b2, "w3": w3, "b3": b3}


def mlp_reference(x, p):
    h1 = jnp.maximum(x @ p["w1"].T + p["b1"].T, 0.0)
    h2 = jnp.maximum(h1 @ p["w2"].T + p["b2"].T, 0.0)
    return h2 @ p["w3"].T + p["b3"].T


if __name__ == "__main__":
    # Titanic-style feature vector: small batch, 8 input features, 2 classes.
    N_IN, N_OUT = 8, 2

    key = jax.random.PRNGKey(0)
    kx, kp, kx2 = jax.random.split(key, 3)
    params = init_params(kp, N_IN, N_OUT)

    # 1) Small-batch serving path: single block, no padding, no ragged block.
    B = 16
    x = jax.random.normal(kx, (B, N_IN), jnp.float32)
    out = jax.block_until_ready(mlp_forward(x, params))
    ref = mlp_reference(x, params)
    assert out.shape == (B, N_OUT)
    assert jnp.allclose(out, ref, atol=1e-5, rtol=1e-5), "mismatch vs. reference (B=16)"

    # 2) Multi-step path: non-dividing batch -> 2 parallel grid steps with a
    #    ragged last block (exercises the v7x two-TensorCore split).
    B2 = 300
    x2 = jax.random.normal(kx2, (B2, N_IN), jnp.float32)
    out2 = jax.block_until_ready(mlp_forward(x2, params))
    ref2 = mlp_reference(x2, params)
    assert out2.shape == (B2, N_OUT)
    assert jnp.allclose(out2, ref2, atol=1e-5, rtol=1e-5), "mismatch vs. reference (B=300)"

    print("KERNEL_OK")
</pallas_src>

<mosaic_0001>
module attributes {stable_mosaic.version = 11 : i64} {
  func.func @mlp_kernel(%arg0: i32, %arg1: memref<16x8xf32, #tpu.memory_space<vmem>>, %arg2: memref<32x8xf32, #tpu.memory_space<vmem>>, %arg3: memref<32x1xf32, #tpu.memory_space<vmem>>, %arg4: memref<32x32xf32, #tpu.memory_space<vmem>>, %arg5: memref<32x1xf32, #tpu.memory_space<vmem>>, %arg6: memref<2x32xf32, #tpu.memory_space<vmem>>, %arg7: memref<2x1xf32, #tpu.memory_space<vmem>>, %arg8: memref<2x16xf32, #tpu.memory_space<vmem>>) attributes {dimension_semantics = [#tpu.dimension_semantics<parallel>], iteration_bounds = array<i64: 1>, scalar_prefetch = 0 : i64, scratch_operands = 0 : i64, tpu.core_type = #tpu.core_type<tc>, window_params = [{transform_indices = @transform_0, window_bounds = array<i64: 16, 8>}, {pipeline_mode = #tpu.pipeline_mode<synchronous>, transform_indices = @transform_1, window_bounds = array<i64: 32, 8>}, {pipeline_mode = #tpu.pipeline_mode<synchronous>, transform_indices = @transform_2, window_bounds = array<i64: 32, 1>}, {pipeline_mode = #tpu.pipeline_mode<synchronous>, transform_indices = @transform_3, window_bounds = array<i64: 32, 32>}, {pipeline_mode = #tpu.pipeline_mode<synchronous>, transform_indices = @transform_4, window_bounds = array<i64: 32, 1>}, {pipeline_mode = #tpu.pipeline_mode<synchronous>, transform_indices = @transform_5, window_bounds = array<i64: 2, 32>}, {pipeline_mode = #tpu.pipeline_mode<synchronous>, transform_indices = @transform_6, window_bounds = array<i64: 2, 1>}, {transform_indices = @transform_7, window_bounds = array<i64: 2, 16>}]} {
    %c0 = arith.constant 0 : index
    %c0_0 = arith.constant 0 : index
    %0 = vector.load %arg1[%c0, %c0_0] : memref<16x8xf32, #tpu.memory_space<vmem>>, vector<16x8xf32>
    %1 = tpu.transpose %0, [1, 0] : vector<16x8xf32> -> vector<8x16xf32>
    %c0_1 = arith.constant 0 : index
    %c0_2 = arith.constant 0 : index
    %2 = vector.load %arg2[%c0_1, %c0_2] : memref<32x8xf32, #tpu.memory_space<vmem>>, vector<32x8xf32>
    %cst = arith.constant dense<0.000000e+00> : vector<32x16xf32>
    %3 = tpu.matmul %2, %1, %cst {dimension_numbers = #tpu.dot_dimension_numbers<[1], [0], [0], [1], [0, 0, 1, 1], [], []>} : vector<32x8xf32>, vector<8x16xf32>, vector<32x16xf32> -> vector<32x16xf32>
    %c0_3 = arith.constant 0 : index
    %c0_4 = arith.constant 0 : index
    %4 = vector.load %arg3[%c0_3, %c0_4] : memref<32x1xf32, #tpu.memory_space<vmem>>, vector<32x1xf32>
    %5 = vector.broadcast %4 : vector<32x1xf32> to vector<32x16xf32>
    %6 = arith.addf %3, %5 : vector<32x16xf32>
    %cst_5 = arith.constant 0.000000e+00 : f32
    %7 = vector.broadcast %cst_5 : f32 to vector<32x16xf32>
    %8 = arith.maximumf %6, %7 : vector<32x16xf32>
    %c0_6 = arith.constant 0 : index
    %c0_7 = arith.constant 0 : index
    %9 = vector.load %arg4[%c0_6, %c0_7] : memref<32x32xf32, #tpu.memory_space<vmem>>, vector<32x32xf32>
    %cst_8 = arith.constant dense<0.000000e+00> : vector<32x16xf32>
    %10 = tpu.matmul %9, %8, %cst_8 {dimension_numbers = #tpu.dot_dimension_numbers<[1], [0], [0], [1], [0, 0, 1, 1], [], []>} : vector<32x32xf32>, vector<32x16xf32>, vector<32x16xf32> -> vector<32x16xf32>
    %c0_9 = arith.constant 0 : index
    %c0_10 = arith.constant 0 : index
    %11 = vector.load %arg5[%c0_9, %c0_10] : memref<32x1xf32, #tpu.memory_space<vmem>>, vector<32x1xf32>
    %12 = vector.broadcast %11 : vector<32x1xf32> to vector<32x16xf32>
    %13 = arith.addf %10, %12 : vector<32x16xf32>
    %cst_11 = arith.constant 0.000000e+00 : f32
    %14 = vector.broadcast %cst_11 : f32 to vector<32x16xf32>
    %15 = arith.maximumf %13, %14 : vector<32x16xf32>
    %c0_12 = arith.constant 0 : index
    %c0_13 = arith.constant 0 : index
    %16 = vector.load %arg6[%c0_12, %c0_13] : memref<2x32xf32, #tpu.memory_space<vmem>>, vector<2x32xf32>
    %cst_14 = arith.constant dense<0.000000e+00> : vector<2x16xf32>
    %17 = tpu.matmul %16, %15, %cst_14 {dimension_numbers = #tpu.dot_dimension_numbers<[1], [0], [0], [1], [0, 0, 1, 1], [], []>} : vector<2x32xf32>, vector<32x16xf32>, vector<2x16xf32> -> vector<2x16xf32>
    %c0_15 = arith.constant 0 : index
    %c0_16 = arith.constant 0 : index
    %18 = vector.load %arg7[%c0_15, %c0_16] : memref<2x1xf32, #tpu.memory_space<vmem>>, vector<2x1xf32>
    %19 = vector.broadcast %18 : vector<2x1xf32> to vector<2x16xf32>
    %20 = arith.addf %17, %19 : vector<2x16xf32>
    %c0_17 = arith.constant 0 : index
    %c0_18 = arith.constant 0 : index
    %21 = vector.load %arg8[%c0_17, %c0_18] : memref<2x16xf32, #tpu.memory_space<vmem>>, vector<2x16xf32>
    tpu.vector_store %arg8[%c0_17, %c0_18], %20 {strides = array<i32>} : memref<2x16xf32, #tpu.memory_space<vmem>>, vector<2x16xf32>,
    return
  }
  func.func @transform_0(%arg0: i32) -> (i32, i32) {
    %c0_i32 = arith.constant 0 : i32
    %c0_i32_0 = arith.constant 0 : i32
    return %arg0, %c0_i32 : i32, i32
  }
  func.func @transform_1(%arg0: i32) -> (i32, i32) {
    %c0_i32 = arith.constant 0 : i32
    %c0_i32_0 = arith.constant 0 : i32
    %c0_i32_1 = arith.constant 0 : i32
    return %c0_i32, %c0_i32_0 : i32, i32
  }
  func.func @transform_2(%arg0: i32) -> (i32, i32) {
    %c0_i32 = arith.constant 0 : i32
    %c0_i32_0 = arith.constant 0 : i32
    %c0_i32_1 = arith.constant 0 : i32
    return %c0_i32, %c0_i32_0 : i32, i32
  }
  func.func @transform_3(%arg0: i32) -> (i32, i32) {
    %c0_i32 = arith.constant 0 : i32
    %c0_i32_0 = arith.constant 0 : i32
    %c0_i32_1 = arith.constant 0 : i32
    return %c0_i32, %c0_i32_0 : i32, i32
  }
  func.func @transform_4(%arg0: i32) -> (i32, i32) {
    %c0_i32 = arith.constant 0 : i32
    %c0_i32_0 = arith.constant 0 : i32
    %c0_i32_1 = arith.constant 0 : i32
    return %c0_i32, %c0_i32_0 : i32, i32
  }
  func.func @transform_5(%arg0: i32) -> (i32, i32) {
    %c0_i32 = arith.constant 0 : i32
    %c0_i32_0 = arith.constant 0 : i32
    %c0_i32_1 = arith.constant 0 : i32
    return %c0_i32, %c0_i32_0 : i32, i32
  }
  func.func @transform_6(%arg0: i32) -> (i32, i32) {
    %c0_i32 = arith.constant 0 : i32
    %c0_i32_0 = arith.constant 0 : i32
    %c0_i32_1 = arith.constant 0 : i32
    return %c0_i32, %c0_i32_0 : i32, i32
  }
  func.func @transform_7(%arg0: i32) -> (i32, i32) {
    %c0_i32 = arith.constant 0 : i32
    %c0_i32_0 = arith.constant 0 : i32
    return %c0_i32, %arg0 : i32, i32
  }
}

</mosaic_0001>

<bundles_post_ra>
// kernel: tpu_custom_call.1
= control target key start
LH: loop header
LB: loop body
LE: loop exit
PB: predicated region body
PF: predicated region fallthrough
CT: control target
= control target key end

     0   :  { %vm57_vm0 = vcmask 64512   ;;  %v484_v3 = vmov 0   ;;  %s604_s0 = inlined_call_operand.vmem [shape: f32[16,8], index: 0, kind: input, shape index: {}]   ;;  %s605_s1 = inlined_call_operand.vmem [shape: f32[32,8], index: 1, kind: input, shape index: {}]   ;;  %s606_s2 = inlined_call_operand.vmem [shape: f32[32,1], index: 2, kind: input, shape index: {}]   ;;  %s607_s3 = inlined_call_operand.vmem [shape: f32[32,32], index: 3, kind: input, shape index: {}]   ;;  %s608_s4 = inlined_call_operand.vmem [shape: f32[32,1], index: 4, kind: input, shape index: {}]   ;;  %s609_s5 = inlined_call_operand.vmem [shape: f32[2,32], index: 5, kind: input, shape index: {}]   ;;  %s610_s6 = inlined_call_operand.vmem [shape: f32[2,1], index: 6, kind: input, shape index: {}]   ;;  %s611_s7 = inlined_call_operand.hbm [shape: f32[2,16], index: 7, kind: output, shape index: {}]  }
   0x1   :  { %v28_v0 = vld [vmem:[%s604_s0 + $0x8] sm:$0xff]  ;;  %v27_v1 = vld [vmem:[%s604_s0] sm:$0xff]  ;;  %460 = vset.pattern.permute.xlu0 %v484_v3  ;;  %v36_v4 = vld [vmem:[%s606_s2 + $0x18] sm:$0xff]  ;;  %461 = vset.pattern.permute.xlu1 %v484_v3 }
   0x2   :  { %v29_v2 = vld [vmem:[%s605_s1] sm:$0xff]  ;;  %421 = vmatprep.subr.msk.mxu0 %vm57_vm0, %v28_v0  ;;  %54 = vperm.xlu0 %460, %v36_v4   ;;  %v34_v5 = vld [vmem:[%s606_s2 + $0x8] sm:$0xff]  ;;  %v35_v6 = vld [vmem:[%s606_s2 + $0x10] sm:$0xff] }
   0x3   :  { %425 = vmatprep.mubr.msk.f32.mxu0 %vm57_vm0, %v29_v2  ;;  %422 = vmatpush3.xpose.msk.msra.mxu0 %vm57_vm0, %v28_v0 }
   0x4   :  { %423 = vmatprep.subr.msk.mxu0 %vm57_vm0, %v27_v1  ;;  %44 = vperm.xlu1 %461, %v34_v5  }
   0x5   :  { %12 = vsyncpa [#allocation3], 0  ;;  %v30_v7 = vld [vmem:[%s605_s1 + $0x8] sm:$0xff]  ;;  %v33_v8 = vld [vmem:[%s606_s2] sm:$0xff]  ;;  %vm193_vm1 = vcmask 261120   ;;  %v485_v36 = vmov 0.0  }
   0x6   :  { %v31_v9 = vld [vmem:[%s605_s1 + $0x10] sm:$0xff]  ;;  %49 = vperm.xlu0 %460, %v35_v6   ;;  %v172_v10 = vld [vmem:[%s608_s4 + $0x18] sm:$0xff]  ;;  %v170_v13 = vld [vmem:[%s608_s4 + $0x8] sm:$0xff]  ;;  %vm486_vm2 = vmmov 0   ;;  %s487_s11 = smov [#allocation2]   ;;  %vm375_vm3 = vcmask 123904  }
   0x7   :  { %424 = vmatpush3.xpose.msk.msra.mxu0 %vm57_vm0, %v27_v1  ;;  %v32_v11 = vld [vmem:[%s605_s1 + $0x18] sm:$0xff]  ;;  %v171_v12 = vld [vmem:[%s608_s4 + $0x10] sm:$0xff]  ;;  %v169_v14 = vld [vmem:[%s608_s4] sm:$0xff]  ;;  %s383_s12 = sshll.u32 %s487_s11, 4  ;;  %s384_s12 = int_to_ptr.vmem [resolvable:$true] %s383_s12 }
   0x8   :  { %39 = vperm.xlu1 %461, %v33_v8   ;;  %v296_v15 = vld [vmem:[%s610_s6] sm:$0x3]  ;;  %v166_v33 = vld [vmem:[%s607_s3 + $0x8] sm:$0xff]  ;;  %v167_v34 = vld [vmem:[%s607_s3 + $0x10] sm:$0xff]  ;;  %445 = vmatprep.subr.mxu0 %v485_v36  ;;  %s462_s13 = scalar_lea.vmem %s384_s12, 32  ;;  %p467_p1 = scmp.lt.s32.totalorder %s384_s12, %s384_s12 }
   0x9   :  { %v165_v16 = vld [vmem:[%s607_s3] sm:$0xff]  ;;  %v168_v35 = vld [vmem:[%s607_s3 + $0x18] sm:$0xff]  ;;  %p463_p0 = scmp.ne.s32.totalorder %s384_s12, %s462_s13  ;;  %p468_p2 = scmp.lt.s32.totalorder %s462_s13, %s462_s13 }
   0xa   :  { %426 = vmatmul.mubr.msk.f32.vlgmr.msra.gmra.mxu0 %vm57_vm0, %v30_v7  ;;  %190 = vperm.xlu0 %460, %v172_v10   ;;  %v295_v53 = vld [vmem:[%s609_s5] sm:$0x3] }
   0xb   :  { %428 = vmatprep.mubr.msk.f32.mxu0 %vm57_vm0, %v31_v9  ;;  %439 = vmatprep.mubr.msk.f32.mxu1 %vm193_vm1, %v165_v16  ;;  %p469_p3 = por %p468_p2, %p467_p1 }
   0xc   :  { %185 = vperm.xlu1 %461, %v171_v12  }
   0xd   :  { %p470_p4 = pnand %p469_p3, %p463_p0 }
   0xe   :  { %429 = vmatmul.mubr.msk.f32.gmra.mxu0 %vm57_vm0, %v32_v11  ;;  %180 = vperm.xlu0 %460, %v170_v13  }
   0xf   :  { %453 = vmatprep.mubr.msk.f32.mxu0 %vm486_vm2, %v485_v36 }
  0x10   :  { %175 = vperm.xlu1 %461, %v169_v14  }
  0x12   :  { %299 = vperm.xlu0 %460, %v296_v15  }
  0x7d   :  { %v55_v17 = vpop.permute.xlu0 %54 }
  0x7f   :  { %v45_v19 = vpop.permute.xlu1 %44 }
  0x81   :  { %v50_v23 = vpop.permute.xlu0 %49 }
  0x83   :  { %v40_v28 = vpop.permute.xlu1 %39 }
  0x85   :  { %v191_v37 = vpop.permute.xlu0 %190 }
  0x87   :  { %v186_v39 = vpop.permute.xlu1 %185 }
  0x89   :  { %v181_v43 = vpop.permute.xlu0 %180 }
  0x8b   :  { %v176_v48 = vpop.permute.xlu1 %175 }
  0x8d   :  { %v300_v54 = vpop.permute.xlu0 %299 }
  0xca   :  { %v427_v18 = vpop.f32.mrf.mxu0 }
  0xcb   :  { %v148_v25 = vadd.f32 %v427_v18, %v45_v19 }
  0xcc   :  { %v142_v20 = vpop.f32.mrf.mxu0 }
  0xcd   :  { %v143_v29 = vadd.f32 %v142_v20, %v40_v28  ;;  %v162_v31 = vmax.f32 %v148_v25, 0.0 }
  0xce   :  { %v430_v21 = vpop.f32.mrf.mxu0 }
  0xcf   :  { %v158_v22 = vadd.f32 %v430_v21, %v55_v17  ;;  %v161_v32 = vmax.f32 %v143_v29, 0.0 }
  0xd0   :  { %v152_v24 = vpop.f32.mrf.mxu0 }
  0xd1   :  { %v164_v26 = vmax.f32 %v158_v22, 0.0  ;;  %v153_v27 = vadd.f32 %v152_v24, %v50_v23 }
  0xd3   :  { %v163_v30 = vmax.f32 %v153_v27, 0.0  ;;  %431 = vmatprep.subr.mxu1 %v164_v26 }
  0xd4   :  { %432 = vmatpush3.msra.mxu1 %v164_v26 }
  0xd5   :  { %433 = vmatprep.subr.mxu1 %v163_v30 }
  0xd6   :  { %434 = vmatpush3.msra.mxu1 %v163_v30 }
  0xd7   :  { %435 = vmatprep.subr.mxu1 %v162_v31 }
  0xd8   :  { %436 = vmatpush3.msra.mxu1 %v162_v31 }
  0xd9   :  { %437 = vmatprep.subr.mxu1 %v161_v32 }
  0xda   :  { %438 = vmatpush3.msra.mxu1 %v161_v32 }
  0xdb   :  { %440 = vmatmul.mubr.msk.f32.vlgmr.msra.gmra.mxu1 %vm193_vm1, %v166_v33 }
  0xdc   :  { %442 = vmatprep.mubr.msk.f32.mxu1 %vm193_vm1, %v167_v34 }
  0xdf   :  { %443 = vmatmul.mubr.msk.f32.gmra.mxu1 %vm193_vm1, %v168_v35 }
 0x19b   :  { %v441_v38 = vpop.f32.mrf.mxu1 }
 0x19c   :  { %v278_v45 = vadd.f32 %v441_v38, %v181_v43 }
 0x19d   :  { %v272_v40 = vpop.f32.mrf.mxu1 }
 0x19e   :  { %v273_v49 = vadd.f32 %v272_v40, %v176_v48  ;;  %v292_v51 = vmax.f32 %v278_v45, 0.0 }
 0x19f   :  { %v444_v41 = vpop.f32.mrf.mxu1 }
 0x1a0   :  { %v288_v42 = vadd.f32 %v444_v41, %v191_v37  ;;  %v291_v52 = vmax.f32 %v273_v49, 0.0 }
 0x1a1   :  { %v282_v44 = vpop.f32.mrf.mxu1 }
 0x1a2   :  { %v294_v46 = vmax.f32 %v288_v42, 0.0  ;;  %v283_v47 = vadd.f32 %v282_v44, %v186_v39 }
 0x1a4   :  { %v293_v50 = vmax.f32 %v283_v47, 0.0  ;;  %446 = vmatpush3.msra.mxu0 %v294_v46 }
 0x1a5   :  { %447 = vmatprep.subr.mxu0 %v485_v36 }
 0x1a6   :  { %448 = vmatpush3.msra.mxu0 %v293_v50 }
 0x1a7   :  { %449 = vmatprep.subr.mxu0 %v485_v36 }
 0x1a8   :  { %450 = vmatpush3.msra.mxu0 %v292_v51 }
 0x1a9   :  { %451 = vmatprep.subr.mxu0 %v485_v36 }
 0x1aa   :  { %452 = vmatpush3.msra.mxu0 %v291_v52 }
 0x1ab   :  { %454 = vmatmul.mubr.msk.f32.vlgmr.msra.gmra.mxu0 %vm193_vm1, %v295_v53 }
 0x26b   :  { %v371_v55 = vpop.f32.mrf.mxu0 }
 0x26c   :  { %v372_v56 = vadd.f32 %v371_v55, %v300_v54 }
 0x26d   :  { %v455_v57 = vpop.f32.mrf.mxu0 }
 0x26e   :  { %376 = vst.msk [vmem:[#allocation2] sm:$0x3] %vm375_vm3, %v372_v56 }
 0x26f   :  { %473 = shalt.err (!%p470_p4)
}
 0x270   :  { %386 = dma.vmem_to_hbm [thread:$0]  %s384_s12, 32, %s611_s7, [#allocation3]  }
 0x271   :  { %482 = dma.done.wait [#allocation3], 32  }
 0x272   :  { %483 = vsyncadd [#allocation3], 4294967264 }
 0x273   :  { %390 = vsyncpa [#allocation3], 1 }

</bundles_post_ra>
